<compile_context>
chip_gen: v5e
topology: v5e:2x2
jax: 0.10.0
libtpu: 0.0.40
codegen_flags: <defaults>
</compile_context>

<pallas_src>
from functools import partial

import jax
import jax.numpy as jnp
from jax.experimental import pallas as pl
from jax.experimental.pallas import tpu as pltpu


# ---------------------------------------------------------------------------
# Small helpers
# ---------------------------------------------------------------------------
def _silu(v):
    # exp and the approximate reciprocal both execute on the EUP slot.
    return v * pl.reciprocal(1.0 + jnp.exp(-v), approx=True)


_ROLL_JNP_COMPAT = None


def _roll_matches_jnp():
    """One-time hardware probe: True iff pltpu.roll follows jnp.roll's shift
    direction (result[i] = x[(i - shift) % n]).  Guards the RepVgg tap shifts
    against a rotation-convention flip across jax/Mosaic versions."""
    global _ROLL_JNP_COMPAT
    if _ROLL_JNP_COMPAT is None:
        def k(x_ref, o_ref):
            o_ref[...] = pltpu.roll(x_ref[...], 1, 0)

        x = jnp.arange(8 * 128, dtype=jnp.float32).reshape(8, 128)
        y = pl.pallas_call(
            k, out_shape=jax.ShapeDtypeStruct((8, 128), jnp.float32))(x)
        _ROLL_JNP_COMPAT = bool(jnp.all(y[1] == x[0]))
    return _ROLL_JNP_COMPAT


# ---------------------------------------------------------------------------
# Pallas kernel: full CSPRepLayer for one batch tile (bt, Cin, S_pad) -> (bt, Cout, S_pad)
# ---------------------------------------------------------------------------
def csp_rep_kernel(*refs, num_blocks, H, W, S_pad, bt, ch, has_conv3, roll_sign):
    if has_conv3:
        (x_ref, wc12_ref, bc12_ref, wrep_ref, brep_ref,
         wc3_ref, bc3_ref, o_ref) = refs
    else:
        x_ref, wc12_ref, bc12_ref, wrep_ref, brep_ref, o_ref = refs
        wc3_ref = bc3_ref = None

    M = bt * S_pad

    # --- NCHW tile -> channels-last slab: one batched XLU transpose, cast to bf16 ---
    xb = jnp.transpose(x_ref[...], (0, 2, 1)).reshape(M, -1).astype(jnp.bfloat16)

    # --- fused conv1 || conv2 : single 1x1 matmul (bf16 operands, f32 accumulate) ---
    y12 = jnp.dot(xb, wc12_ref[...], preferred_element_type=jnp.float32) + bc12_ref[...]
    y12 = _silu(y12)
    z = y12[:, :ch]            # conv1 branch -> RepVgg bottlenecks (f32)
    y2 = y12[:, ch:]           # conv2 branch -> skip connection   (f32)

    # --- geometry masks for the 9 taps (hoisted; pre-broadcast once to (M, ch)) ---
    idx = jax.lax.broadcasted_iota(jnp.int32, (M, 1), 0)
    local = idx % S_pad            # per-image flat offset (S may be lane-padded)
    col = local % W
    row = local // W
    offsets = [(dy, dx) for dy in (-1, 0, 1) for dx in (-1, 0, 1)]
    masks = []
    for dy, dx in offsets:
        if dy == 0 and dx == 0:
            masks.append(None)
            continue
        v = (col + dx >= 0) & (col + dx < W) & (row + dy >= 0) & (row + dy < H)
        masks.append(jnp.broadcast_to(v.astype(jnp.float32), (M, ch)))

    # --- RepVgg bottlenecks: im2col over 9 rolled taps -> ONE K=9*ch matmul / block ---
    for j in range(num_blocks):
        taps = []
        for k, (dy, dx) in enumerate(offsets):
            off = dy * W + dx
            if off == 0:
                t = z
            else:
                # shifted[s] = z[s + off]; mask zeroes image-edge / batch / wrap rows
                t = pltpu.roll(z, (roll_sign * off) % M, 0) * masks[k]
            taps.append(t.astype(jnp.bfloat16))
        zcat = jnp.concatenate(taps, axis=1)                         # (M, 9*ch) bf16
        acc = jnp.dot(zcat, wrep_ref[j], preferred_element_type=jnp.float32)
        z = _silu(acc + brep_ref[j])

    out = z + y2

    # --- conv3 (1x1 + BN + SiLU) when hidden_channels != out_channels ---
    if has_conv3:
        out = _silu(jnp.dot(out.astype(jnp.bfloat16), wc3_ref[...],
                            preferred_element_type=jnp.float32) + bc3_ref[...])

    # --- channels-last -> NCHW tile write (one batched transpose, lane-dense store) ---
    o_ref[...] = jnp.transpose(out.reshape(bt, S_pad, -1), (0, 2, 1)).astype(o_ref.dtype)


# ---------------------------------------------------------------------------
# Parameter preparation: fold BN, fuse conv1||conv2, im2col-pack the RepVgg weights.
# ---------------------------------------------------------------------------
def fuse_conv_bn(w, g, be, m, v, eps=1e-5):
    """(Cout,Cin,kh,kw) conv + BN -> (kh*kw, Cin, Cout) matmul taps + (1, Cout) bias."""
    scale = g / jnp.sqrt(v + eps)
    wf = w * scale[:, None, None, None]
    bias = be - m * scale
    kh, kw = w.shape[2], w.shape[3]
    taps = jnp.transpose(wf, (2, 3, 1, 0)).reshape(kh * kw, w.shape[1], w.shape[0])
    return taps.astype(jnp.float32), bias.reshape(1, -1).astype(jnp.float32)


def prepare_kernel_params(params):
    c1, c2 = params["conv1"], params["conv2"]
    t1, b1 = fuse_conv_bn(c1["w"], c1["g"], c1["be"], c1["m"], c1["v"])
    t2, b2 = fuse_conv_bn(c2["w"], c2["g"], c2["be"], c2["m"], c2["v"])
    kp = {
        "wc12": jnp.concatenate([t1[0], t2[0]], axis=1).astype(jnp.bfloat16),  # (Cin, 2*Ch)
        "bc12": jnp.concatenate([b1, b2], axis=1),                              # (1, 2*Ch) f32
    }

    wrep, brep = [], []
    for blk in params["blocks"]:
        t3, bb3 = fuse_conv_bn(blk["w3"], blk["g3"], blk["be3"], blk["m3"], blk["v3"])
        t1x, bb1 = fuse_conv_bn(blk["w1"], blk["g1"], blk["be1"], blk["m1"], blk["v1"])
        fused = t3.at[4].add(t1x[0])               # fold 1x1 branch into the centre tap
        ch = fused.shape[-1]
        wrep.append(fused.reshape(9 * ch, ch))     # im2col-packed (9*Ch, Ch)
        brep.append(bb3 + bb1)
    kp["wrep"] = jnp.stack(wrep).astype(jnp.bfloat16)   # (nb, 9*Ch, Ch)
    kp["brep"] = jnp.stack(brep)                        # (nb, 1, Ch) f32

    has_conv3 = params["conv3"] is not None
    if has_conv3:
        c3 = params["conv3"]
        t3c, b3c = fuse_conv_bn(c3["w"], c3["g"], c3["be"], c3["m"], c3["v"])
        kp["wc3"] = t3c[0].astype(jnp.bfloat16)         # (Ch, Cout)
        kp["bc3"] = b3c                                 # (1, Cout) f32
    return kp, has_conv3


# ---------------------------------------------------------------------------
# Wrapper
# ---------------------------------------------------------------------------
def csp_rep_layer_forward(x_nchw, kparams, *, num_blocks, hidden_channels,
                          has_conv3, batch_tile=None):
    N, Cin, H, W = x_nchw.shape
    S = H * W
    S_pad = ((S + 127) // 128) * 128          # lane-dense slabs (unmasked vst writeback)
    Cout = kparams["wc3"].shape[1] if has_conv3 else hidden_channels

    # Batch tile: default keeps grid >= 2 so v7x's two TensorCores both get work and
    # the software pipeline has something to overlap.  On single-core v5e/v6e pass
    # batch_tile=N to amortise per-step overhead with one big slab instead.
    if batch_tile is None:
        bt = N if N < 2 else max(d for d in range(1, N // 2 + 1) if N % d == 0)
    else:
        bt = min(batch_tile, N)
        while N % bt:
            bt -= 1

    x3 = x_nchw.reshape(N, Cin, S)            # free reshape, NCHW layout preserved
    if S_pad != S:
        x3 = jnp.pad(x3, ((0, 0), (0, 0), (0, S_pad - S)))

    weight_names = ["wc12", "bc12", "wrep", "brep"] + (["wc3", "bc3"] if has_conv3 else [])
    weights = [kparams[k] for k in weight_names]

    # Explicit VMEM budget (v7x has only 64 MiB / 32 MiB scoped default): double-buffered
    # x/out blocks, single-buffered weights, plus live f32/bf16 intermediates.
    M = bt * S_pad
    itemsize = x_nchw.dtype.itemsize
    w_bytes = sum(int(w.size) * w.dtype.itemsize for w in weights)
    live = M * (Cin + 2 * hidden_channels + Cout) * 4 + M * 9 * hidden_channels * 10
    vmem_limit = int(min(64 * 2**20,
                         max(16 * 2**20,
                             2 * bt * (Cin + Cout) * S_pad * itemsize
                             + 2 * w_bytes + 2 * live)))

    kern = partial(csp_rep_kernel, num_blocks=num_blocks, H=H, W=W, S_pad=S_pad,
                   bt=bt, ch=hidden_channels, has_conv3=has_conv3,
                   roll_sign=-1 if _roll_matches_jnp() else 1)

    def build(weight_pipeline_mode):
        def const_spec(arr):
            nd = arr.ndim
            kwargs = {}
            if weight_pipeline_mode is not None:
                kwargs["pipeline_mode"] = weight_pipeline_mode
            return pl.BlockSpec(arr.shape, lambda n, _nd=nd: (0,) * _nd, **kwargs)

        return pl.pallas_call(
            kern,
            out_shape=jax.ShapeDtypeStruct((N, Cout, S_pad), x_nchw.dtype),
            grid=(N // bt,),
            in_specs=[pl.BlockSpec((bt, Cin, S_pad), lambda n: (n, 0, 0))]
                     + [const_spec(w) for w in weights],
            out_specs=pl.BlockSpec((bt, Cout, S_pad), lambda n: (n, 0, 0)),
            compiler_params=pltpu.CompilerParams(
                dimension_semantics=("parallel",),
                vmem_limit_bytes=vmem_limit),
        )

    try:
        # Weights/biases are block-invariant: single-buffer them (saves VMEM on v7x).
        out = build(pl.Buffered(1))(x3, *weights)
        jax.block_until_ready(out)
    except Exception:
        # Portability fallback: default double-buffering if Buffered(1) is rejected.
        out = build(None)(x3, *weights)

    if S_pad != S:
        out = out[..., :S]
    return out.reshape(N, Cout, H, W)


# ---------------------------------------------------------------------------
# Pure-JAX reference (mirrors the PyTorch eval-mode forward) for correctness
# ---------------------------------------------------------------------------
def _conv_norm_act_ref(x, w, g, be, m, v, act, eps=1e-5):
    k = w.shape[2]
    pad = (k - 1) // 2
    y = jax.lax.conv_general_dilated(
        x, w, window_strides=(1, 1), padding=[(pad, pad), (pad, pad)],
        dimension_numbers=("NCHW", "OIHW", "NCHW"),
        precision=jax.lax.Precision.HIGHEST)
    inv = jax.lax.rsqrt(v + eps)
    y = (y - m[None, :, None, None]) * inv[None, :, None, None] \
        * g[None, :, None, None] + be[None, :, None, None]
    if act == "silu":
        y = y * jax.nn.sigmoid(y)
    return y


def csp_rep_layer_ref(x, params):
    c1, c2 = params["conv1"], params["conv2"]
    y1 = _conv_norm_act_ref(x, c1["w"], c1["g"], c1["be"], c1["m"], c1["v"], "silu")
    y2 = _conv_norm_act_ref(x, c2["w"], c2["g"], c2["be"], c2["m"], c2["v"], "silu")
    z = y1
    for blk in params["blocks"]:
        a = _conv_norm_act_ref(z, blk["w3"], blk["g3"], blk["be3"], blk["m3"], blk["v3"], "none")
        b = _conv_norm_act_ref(z, blk["w1"], blk["g1"], blk["be1"], blk["m1"], blk["v1"], "none")
        s = a + b
        z = s * jax.nn.sigmoid(s)
    out = z + y2
    if params["conv3"] is not None:
        c3 = params["conv3"]
        out = _conv_norm_act_ref(out, c3["w"], c3["g"], c3["be"], c3["m"], c3["v"], "silu")
    return out


if __name__ == "__main__":
    # CSPRepLayer(in_channels=128, out_channels=256, num_blocks=2, expansion=0.5)
    N, Cin, H, W = 2, 128, 16, 16
    Cout, num_blocks, expansion = 256, 2, 0.5
    hidden = int(Cout * expansion)           # 128
    has_conv3 = hidden != Cout               # True -> conv3 present

    key = jax.random.PRNGKey(0)
    kit = iter(jax.random.split(key, 64))

    def conv_w(co, ci, ks):
        return (0.02 * jax.random.normal(next(kit), (co, ci, ks, ks))).astype(jnp.float32)

    def bn_params(co):
        return dict(
            g=jax.random.uniform(next(kit), (co,), jnp.float32, 0.5, 1.5),
            be=(0.1 * jax.random.normal(next(kit), (co,))).astype(jnp.float32),
            m=(0.1 * jax.random.normal(next(kit), (co,))).astype(jnp.float32),
            v=jax.random.uniform(next(kit), (co,), jnp.float32, 0.5, 1.5),
        )

    params = {
        "conv1": dict(w=conv_w(hidden, Cin, 1), **bn_params(hidden)),
        "conv2": dict(w=conv_w(hidden, Cin, 1), **bn_params(hidden)),
        "blocks": [],
        "conv3": dict(w=conv_w(Cout, hidden, 1), **bn_params(Cout)) if has_conv3 else None,
    }
    for _ in range(num_blocks):
        b3, b1 = bn_params(hidden), bn_params(hidden)
        params["blocks"].append(dict(
            w3=conv_w(hidden, hidden, 3),
            g3=b3["g"], be3=b3["be"], m3=b3["m"], v3=b3["v"],
            w1=conv_w(hidden, hidden, 1),
            g1=b1["g"], be1=b1["be"], m1=b1["m"], v1=b1["v"],
        ))

    x = jax.random.normal(next(kit), (N, Cin, H, W), jnp.float32)

    kparams, has_c3 = prepare_kernel_params(params)
    out = csp_rep_layer_forward(x, kparams, num_blocks=num_blocks,
                                hidden_channels=hidden, has_conv3=has_c3,
                                batch_tile=1)        # grid=(2,) -> both v7x cores busy
    jax.block_until_ready(out)

    ref = csp_rep_layer_ref(x, params)
    assert out.shape == (N, Cout, H, W)
    err = float(jnp.max(jnp.abs(out - ref)))
    # Tolerance reflects the intentional bf16 MXU operands + approx reciprocal in SiLU
    # (reference runs in f32/HIGHEST precision).
    assert jnp.allclose(out, ref, atol=2e-2, rtol=2e-2), err
    print("KERNEL_OK")
</pallas_src>

<mosaic_0001>
module attributes {stable_mosaic.version = 11 : i64} {
  func.func @k(%arg0: memref<8x128xf32, #tpu.memory_space<vmem>>, %arg1: memref<8x128xf32, #tpu.memory_space<vmem>>) attributes {dimension_semantics = [], scalar_prefetch = 0 : i64, scratch_operands = 0 : i64, tpu.core_type = #tpu.core_type<tc>} {
    %c0 = arith.constant 0 : index
    %c0_0 = arith.constant 0 : index
    %0 = vector.load %arg0[%c0, %c0_0] : memref<8x128xf32, #tpu.memory_space<vmem>>, vector<8x128xf32>
    %c1_i32 = arith.constant 1 : i32
    %1 = tpu.dynamic_rotate %0 by %c1_i32 dim 0 : vector<8x128xf32>, i32 -> vector<8x128xf32>
    %c0_1 = arith.constant 0 : index
    %c0_2 = arith.constant 0 : index
    %2 = vector.load %arg1[%c0_1, %c0_2] : memref<8x128xf32, #tpu.memory_space<vmem>>, vector<8x128xf32>
    tpu.vector_store %arg1[%c0_1, %c0_2], %1 {strides = array<i32>} : memref<8x128xf32, #tpu.memory_space<vmem>>, vector<8x128xf32>,
    return
  }
}

</mosaic_0001>

<bundles_post_ra>
// kernel: tpu_custom_call.1
= control target key start
LH: loop header
LB: loop body
LE: loop exit
PB: predicated region body
PF: predicated region fallthrough
CT: control target
= control target key end

     0   :  { %6 = vsyncpa [#allocation3], 0  ;;  %s115_s0 = inlined_call_operand.hbm [shape: f32[8,128], index: 0, kind: input, shape index: {}]   ;;  %s116_s1 = inlined_call_operand.hbm [shape: f32[8,128], index: 1, kind: output, shape index: {}]  }
   0x1   :  { %7 = vsyncpa [#allocation4], 0  ;;  %s13_s8 = sshll.u32 %s115_s0, 4  ;;  %s97_s9 = smov [#allocation2]   ;;  %s14_s8 = int_to_ptr.hbm [resolvable:$true] %s13_s8 }
   0x2   :  { %s15_s10 = sshll.u32 %s97_s9, 4  ;;  %s16_s10 = int_to_ptr.vmem [resolvable:$true] %s15_s10 }
   0x3   :  { %18 = dma.hbm_to_vmem [thread:$0]  %s14_s8, 128, %s16_s10, [#allocation3]  }
   0x4   :  { %93 = dma.done.wait [#allocation3], 128  }
   0x5   :  { %94 = vsyncadd [#allocation3], 4294967168  ;;  %s98_s11 = smov [#allocation5]   ;;  %s33_s15 = sshll.u32 %s116_s1, 4  ;;  %v23_v0 = vld [vmem:[#allocation2] sm:$0xff]  ;;  %s34_s15 = int_to_ptr.hbm [resolvable:$true] %s33_s15 }
   0x6   :  { %s31_s12 = sshll.u32 %s98_s11, 4  ;;  %v24_v1 = vrot.slane %v23_v0, 7  ;;  %s32_s12 = int_to_ptr.vmem [resolvable:$true] %s31_s12 }
   0x8   :  { %25 = vst [vmem:[#allocation5] sm:$0xff] %v24_v1 }
   0x9   :  { %36 = dma.vmem_to_hbm [thread:$0]  %s32_s12, 128, %s34_s15, [#allocation4]  }
   0xa   :  { %95 = dma.done.wait [#allocation4], 128  }
   0xb   :  { %96 = vsyncadd [#allocation4], 4294967168 }
   0xc   :  { %41 = vsyncpa [#allocation3], 1 }
   0xd   :  { %42 = vsyncpa [#allocation4], 1 }

</bundles_post_ra>
